<compile_context>
chip_gen: v6e
topology: v6e:2x2x1
jax: 0.10.0
libtpu: 0.0.40
codegen_flags: <defaults>
</compile_context>

<pallas_src>
import math

import jax
import jax.numpy as jnp
from jax.experimental import pallas as pl
from jax.experimental.pallas import tpu as pltpu

_LN_EPS = 1e-5  # PyTorch nn.LayerNorm default


# ----------------------------------------------------------------------------
# Fused kernel
# ----------------------------------------------------------------------------
def _layernorm(y, gamma, beta):
    mean = jnp.mean(y, axis=-1, keepdims=True)
    centered = y - mean
    var = jnp.mean(centered * centered, axis=-1, keepdims=True)
    return centered * jax.lax.rsqrt(var + _LN_EPS) * gamma + beta


def _bf16_dot(a_f32, w_bf16):
    """MXU-native bf16 operands, f32 accumulation (epilogue stays f32)."""
    return jnp.dot(a_f32.astype(jnp.bfloat16), w_bf16,
                   preferred_element_type=jnp.float32)


def _make_dynamics_kernel(num_blocks, num_reward_hidden, state_dim):
    """Builds a kernel body unrolled over the (static) layer structure."""

    def kernel(*refs):
        (state_ref, action_ref, wa_ref, va_ref,
         rw1_ref, rw2_ref, rvec_ref) = refs[:7]
        pos = 7
        reward_hidden = []
        for _ in range(num_reward_hidden):
            reward_hidden.append((refs[pos], refs[pos + 1]))
            pos += 2
        wf_ref, bf_ref = refs[pos], refs[pos + 1]
        out_ref = refs[pos + 2]                  # (tb, OUT) lane-dense packed slab

        # --- action block: Linear -> LayerNorm -> ReLU ------------------------
        av = va_ref[...]                               # (3, S): [bias, gamma, beta]
        y = _bf16_dot(action_ref[...], wa_ref[...]) + av[0:1, :]
        emb = jnp.maximum(_layernorm(y, av[1:2, :], av[2:3, :]), 0.0)

        x = state_ref[...] + emb                       # residual stream stays f32

        # --- residual tower (pre-activation residual MLP blocks) --------------
        for i in range(num_blocks):
            vec = rvec_ref[i]                          # (6, S): g1,be1,b1,g2,be2,b2
            g1, be1, b1 = vec[0:1, :], vec[1:2, :], vec[2:3, :]
            g2, be2, b2 = vec[3:4, :], vec[4:5, :], vec[5:6, :]
            h1 = jnp.maximum(_layernorm(x, g1, be1), 0.0)
            x1 = _bf16_dot(h1, rw1_ref[i]) + b1
            h2 = jnp.maximum(_layernorm(x1, g2, be2), 0.0)
            x2 = _bf16_dot(h2, rw2_ref[i]) + b2
            x = x + x2

        # --- reward MLP: (Linear -> LayerNorm -> ReLU)* -> Linear --------------
        h = x
        for (w_ref, v_ref) in reward_hidden:
            v = v_ref[...]                             # (3, Dout): [bias, gamma, beta]
            y = _bf16_dot(h, w_ref[...]) + v[0:1, :]
            h = jnp.maximum(_layernorm(y, v[1:2, :], v[2:3, :]), 0.0)
        reward_pad = _bf16_dot(h, wf_ref[...]) + bf_ref[...]   # (tb, OUT-S)

        # --- lane-dense packed writeback ---------------------------------------
        # next_state -> lanes [0, S); zero-padded reward -> lanes [S, OUT).
        # The HBM writeback of the (tb, OUT) block is a dense, unmasked store.
        out_ref[:, :state_dim] = x
        out_ref[:, state_dim:] = reward_pad

    return kernel


# ----------------------------------------------------------------------------
# Batch-tile policy
# ----------------------------------------------------------------------------
def _pick_batch_tile(B):
    """A few large grid steps (<=512 rows, 16-row aligned for bf16 sublanes),
    and >=2 steps when B allows it so v7x can shard the batch over its 2 TCs."""
    for cand in (512, 256, 128, 64, 32, 16):
        if B % cand == 0 and B // cand >= 2:
            return cand
    return B            # tiny / odd batches: single block


# ----------------------------------------------------------------------------
# Forward wrapper: one pallas_call for the whole network
# ----------------------------------------------------------------------------
def dynamics_forward(params, state, action, *, batch_tile=None):
    B, S = state.shape
    A = action.shape[1]
    num_blocks = params["rw1"].shape[0]
    reward_hidden = params["reward_hidden"]
    wf, bf = params["reward_fc"]                 # (H, R) bf16, (1, R) f32
    R = wf.shape[1]

    # Lane-dense packed output width (multiple of 128 lanes).
    OUT = max(128, ((S + R + 127) // 128) * 128)
    RP = OUT - S
    # Tiny constant-shape pads of the final reward weight/bias (cheap; done here
    # so the params dict keeps the true reward width statically in its shapes).
    wf_pad = jnp.pad(wf, ((0, 0), (0, RP - R)))
    bf_pad = jnp.pad(bf, ((0, 0), (0, RP - R)))

    inputs = [state, action, params["wa"], params["va"],
              params["rw1"], params["rw2"], params["rvec"]]
    for (w_t, vec) in reward_hidden:
        inputs += [w_t, vec]
    inputs += [wf_pad, bf_pad]

    tb = _pick_batch_tile(B) if batch_tile is None else min(batch_tile, B)
    assert B % tb == 0 and (tb == B or tb % 8 == 0), \
        "batch tile must divide B and be 8-aligned"
    grid = (B // tb,)

    def batched_spec(arr):
        return pl.BlockSpec((tb, arr.shape[1]), lambda i: (i, 0))

    def resident_spec(arr):
        nd = arr.ndim
        return pl.BlockSpec(arr.shape, lambda i, _nd=nd: (0,) * _nd)

    in_specs = [batched_spec(state), batched_spec(action)]
    in_specs += [resident_spec(a) for a in inputs[2:]]

    out_shape = jax.ShapeDtypeStruct((B, OUT), jnp.float32)
    out_specs = pl.BlockSpec((tb, OUT), lambda i: (i, 0))

    # Explicit VMEM budget: double-buffered activation/output tiles + resident
    # weights (kept well under v7x's 64 MiB physical VMEM).
    def nbytes(a):
        return a.size * a.dtype.itemsize
    est = 2 * tb * (S + A + OUT) * 4 + 2 * sum(nbytes(a) for a in inputs[2:])
    vmem_limit = int(min(max(1.5 * est + (4 << 20), 32 << 20), 64 << 20))

    kernel = _make_dynamics_kernel(num_blocks, len(reward_hidden), S)
    packed = pl.pallas_call(
        kernel,
        grid=grid,
        out_shape=out_shape,
        in_specs=in_specs,
        out_specs=out_specs,
        compiler_params=pltpu.CompilerParams(
            dimension_semantics=("parallel",),
            vmem_limit_bytes=vmem_limit),
    )(*inputs)

    next_state = packed[:, :S]
    reward = packed[:, S:S + R]
    return next_state, reward


# ----------------------------------------------------------------------------
# Parameter construction (deterministic, mirroring init_fc where it applies):
#   Linear weights -> orthogonal with gain sqrt(2); biases -> zeros.
#   LayerNorm weight -> ones, bias -> zeros.
#   Weights pre-transposed to (in, out) and stored in bf16 (MXU-native);
#   bias/gamma/beta packed per layer in f32.
# ----------------------------------------------------------------------------
def _orthogonal(key, shape, gain):
    rows, cols = shape
    flat = jax.random.normal(key, (max(rows, cols), min(rows, cols)), jnp.float32)
    q, r = jnp.linalg.qr(flat)
    q = q * jnp.sign(jnp.diag(r))[None, :]      # deterministic sign
    if rows < cols:
        q = q.T
    return gain * q[:rows, :cols]


def make_dynamics_params(key, state_dim, act_dim, reward_support_size,
                         reward_fc_layers, num_blocks, init_zero=False):
    gain = math.sqrt(2.0)
    params = {}

    # action block: Linear(act_dim, state_dim) + LayerNorm(state_dim)
    key, k = jax.random.split(key)
    wa = _orthogonal(k, (state_dim, act_dim), gain)               # torch (out, in)
    params["wa"] = wa.T.astype(jnp.bfloat16)                      # (act_dim, state_dim)
    params["va"] = jnp.stack([
        jnp.zeros((state_dim,), jnp.float32),                     # bias
        jnp.ones((state_dim,), jnp.float32),                      # LN gamma
        jnp.zeros((state_dim,), jnp.float32),                     # LN beta
    ])                                                            # (3, S)

    # residual tower: per block [gamma1, beta1, bias1, gamma2, beta2, bias2]
    rw1, rw2, rvec = [], [], []
    for _ in range(num_blocks):
        key, k1, k2 = jax.random.split(key, 3)
        rw1.append(_orthogonal(k1, (state_dim, state_dim), gain).T.astype(jnp.bfloat16))
        rw2.append(_orthogonal(k2, (state_dim, state_dim), gain).T.astype(jnp.bfloat16))
        rvec.append(jnp.stack([
            jnp.ones((state_dim,), jnp.float32),
            jnp.zeros((state_dim,), jnp.float32),
            jnp.zeros((state_dim,), jnp.float32),
            jnp.ones((state_dim,), jnp.float32),
            jnp.zeros((state_dim,), jnp.float32),
            jnp.zeros((state_dim,), jnp.float32),
        ]))
    params["rw1"] = jnp.stack(rw1)                               # (L, S, S) bf16
    params["rw2"] = jnp.stack(rw2)                               # (L, S, S) bf16
    params["rvec"] = jnp.stack(rvec)                             # (L, 6, S) f32

    # reward MLP (MLPBase): hidden layers then final fc
    sizes = [state_dim] + list(reward_fc_layers)
    hidden = []
    for j in range(len(sizes) - 1):
        key, k = jax.random.split(key)
        w = _orthogonal(k, (sizes[j + 1], sizes[j]), gain).T.astype(jnp.bfloat16)
        vec = jnp.stack([
            jnp.zeros((sizes[j + 1],), jnp.float32),             # bias
            jnp.ones((sizes[j + 1],), jnp.float32),              # LN gamma
            jnp.zeros((sizes[j + 1],), jnp.float32),             # LN beta
        ])
        hidden.append((w, vec))
    params["reward_hidden"] = hidden

    key, k = jax.random.split(key)
    wf = _orthogonal(k, (reward_support_size, sizes[-1]), gain).T.astype(jnp.bfloat16)
    bf = jnp.zeros((1, reward_support_size), jnp.float32)
    if init_zero:
        wf = jnp.zeros_like(wf)
        bf = jnp.zeros_like(bf)
    params["reward_fc"] = (wf, bf)
    return params


# ----------------------------------------------------------------------------
# Pure-JAX reference (same packed bf16 params / same arithmetic) for checks.
# ----------------------------------------------------------------------------
def dynamics_reference(params, state, action):
    def ln(y, gamma, beta):
        mean = jnp.mean(y, axis=-1, keepdims=True)
        var = jnp.mean((y - mean) ** 2, axis=-1, keepdims=True)
        return (y - mean) / jnp.sqrt(var + _LN_EPS) * gamma + beta

    def mm(a, w):   # emulate kernel matmul: bf16 operands, f32 accumulation
        return jnp.dot(a.astype(jnp.bfloat16), w, preferred_element_type=jnp.float32)

    av = params["va"]
    y = mm(action, params["wa"]) + av[0]
    emb = jnp.maximum(ln(y, av[1], av[2]), 0.0)
    x = state + emb
    for i in range(params["rw1"].shape[0]):
        vec = params["rvec"][i]
        h1 = jnp.maximum(ln(x, vec[0], vec[1]), 0.0)
        x1 = mm(h1, params["rw1"][i]) + vec[2]
        h2 = jnp.maximum(ln(x1, vec[3], vec[4]), 0.0)
        x2 = mm(h2, params["rw2"][i]) + vec[5]
        x = x + x2
    next_state = x
    h = x
    for (w, vec) in params["reward_hidden"]:
        y = mm(h, w) + vec[0]
        h = jnp.maximum(ln(y, vec[1], vec[2]), 0.0)
    wf, bf = params["reward_fc"]
    reward = mm(h, wf) + bf
    return next_state, reward


if __name__ == "__main__":
    # Small shapes consistent with the MuZero MLP dynamics network.
    batch, state_dim, act_dim = 8, 64, 32
    reward_support_size, reward_fc_layers, num_blocks = 21, [64], 2

    key = jax.random.PRNGKey(0)
    key, pkey, skey, akey = jax.random.split(key, 4)
    params = make_dynamics_params(
        pkey, state_dim, act_dim, reward_support_size,
        reward_fc_layers, num_blocks, init_zero=False)
    state = jax.random.normal(skey, (batch, state_dim), jnp.float32)
    action = jax.random.normal(akey, (batch, act_dim), jnp.float32)

    fwd = jax.jit(dynamics_forward)
    next_state, reward = fwd(params, state, action)
    next_state, reward = jax.block_until_ready((next_state, reward))

    ref_ns, ref_r = dynamics_reference(params, state, action)
    assert next_state.shape == (batch, state_dim)
    assert reward.shape == (batch, reward_support_size)
    assert jnp.allclose(next_state, ref_ns, atol=1e-3, rtol=1e-3), "next_state mismatch"
    assert jnp.allclose(reward, ref_r, atol=1e-3, rtol=1e-3), "reward mismatch"

    print("KERNEL_OK")
</pallas_src>

<mosaic_0001>
module attributes {stable_mosaic.version = 11 : i64} {
  func.func @kernel(%arg0: i32, %arg1: memref<8x64xf32, #tpu.memory_space<vmem>>, %arg2: memref<8x32xf32, #tpu.memory_space<vmem>>, %arg3: memref<32x64xbf16, #tpu.memory_space<vmem>>, %arg4: memref<3x64xf32, #tpu.memory_space<vmem>>, %arg5: memref<2x64x64xbf16, #tpu.memory_space<vmem>>, %arg6: memref<2x64x64xbf16, #tpu.memory_space<vmem>>, %arg7: memref<2x6x64xf32, #tpu.memory_space<vmem>>, %arg8: memref<64x64xbf16, #tpu.memory_space<vmem>>, %arg9: memref<3x64xf32, #tpu.memory_space<vmem>>, %arg10: memref<64x64xbf16, #tpu.memory_space<vmem>>, %arg11: memref<1x64xf32, #tpu.memory_space<vmem>>, %arg12: memref<8x128xf32, #tpu.memory_space<vmem>>) attributes {dimension_semantics = [#tpu.dimension_semantics<parallel>], iteration_bounds = array<i64: 1>, scalar_prefetch = 0 : i64, scratch_operands = 0 : i64, tpu.core_type = #tpu.core_type<tc>, window_params = [{transform_indices = @transform_0, window_bounds = array<i64: 8, 64>}, {transform_indices = @transform_1, window_bounds = array<i64: 8, 32>}, {pipeline_mode = #tpu.pipeline_mode<synchronous>, transform_indices = @transform_2, window_bounds = array<i64: 32, 64>}, {pipeline_mode = #tpu.pipeline_mode<synchronous>, transform_indices = @transform_3, window_bounds = array<i64: 3, 64>}, {pipeline_mode = #tpu.pipeline_mode<synchronous>, transform_indices = @transform_4, window_bounds = array<i64: 2, 64, 64>}, {pipeline_mode = #tpu.pipeline_mode<synchronous>, transform_indices = @transform_5, window_bounds = array<i64: 2, 64, 64>}, {pipeline_mode = #tpu.pipeline_mode<synchronous>, transform_indices = @transform_6, window_bounds = array<i64: 2, 6, 64>}, {pipeline_mode = #tpu.pipeline_mode<synchronous>, transform_indices = @transform_7, window_bounds = array<i64: 64, 64>}, {pipeline_mode = #tpu.pipeline_mode<synchronous>, transform_indices = @transform_8, window_bounds = array<i64: 3, 64>}, {pipeline_mode = #tpu.pipeline_mode<synchronous>, transform_indices = @transform_9, window_bounds = array<i64: 64, 64>}, {pipeline_mode = #tpu.pipeline_mode<synchronous>, transform_indices = @transform_10, window_bounds = array<i64: 1, 64>}, {transform_indices = @transform_11, window_bounds = array<i64: 8, 128>}]} {
    %c0 = arith.constant 0 : index
    %c0_0 = arith.constant 0 : index
    %0 = vector.load %arg4[%c0, %c0_0] : memref<3x64xf32, #tpu.memory_space<vmem>>, vector<3x64xf32>
    %c0_1 = arith.constant 0 : index
    %c0_2 = arith.constant 0 : index
    %1 = vector.load %arg2[%c0_1, %c0_2] : memref<8x32xf32, #tpu.memory_space<vmem>>, vector<8x32xf32>
    %c0_3 = arith.constant 0 : index
    %c0_4 = arith.constant 0 : index
    %2 = vector.load %arg3[%c0_3, %c0_4] : memref<32x64xbf16, #tpu.memory_space<vmem>>, vector<32x64xbf16>
    %3 = arith.truncf %1 : vector<8x32xf32> to vector<8x32xbf16>
    %cst = arith.constant dense<0.000000e+00> : vector<8x64xf32>
    %4 = tpu.matmul %3, %2, %cst {dimension_numbers = #tpu.dot_dimension_numbers<[1], [0], [0], [1], [0, 0, 1, 1], [], []>} : vector<8x32xbf16>, vector<32x64xbf16>, vector<8x64xf32> -> vector<8x64xf32>
    %5 = vector.extract_strided_slice %0 {offsets = [0, 0], sizes = [1, 64], strides = [1, 1]} : vector<3x64xf32> to vector<1x64xf32>
    %6 = vector.broadcast %5 : vector<1x64xf32> to vector<8x64xf32>
    %7 = arith.addf %4, %6 : vector<8x64xf32>
    %8 = vector.extract_strided_slice %0 {offsets = [1, 0], sizes = [1, 64], strides = [1, 1]} : vector<3x64xf32> to vector<1x64xf32>
    %9 = vector.extract_strided_slice %0 {offsets = [2, 0], sizes = [1, 64], strides = [1, 1]} : vector<3x64xf32> to vector<1x64xf32>
    %cst_5 = arith.constant dense<0.000000e+00> : vector<8xf32>
    %10 = vector.multi_reduction <add>, %7, %cst_5 [1] : vector<8x64xf32> to vector<8xf32>
    %11 = vector.shape_cast %10 : vector<8xf32> to vector<8x1xf32>
    %cst_6 = arith.constant 6.400000e+01 : f32
    %12 = vector.broadcast %cst_6 : f32 to vector<8x1xf32>
    %13 = arith.divf %11, %12 : vector<8x1xf32>
    %14 = vector.broadcast %13 : vector<8x1xf32> to vector<8x64xf32>
    %15 = arith.subf %7, %14 : vector<8x64xf32>
    %16 = arith.mulf %15, %15 : vector<8x64xf32>
    %cst_7 = arith.constant dense<0.000000e+00> : vector<8xf32>
    %17 = vector.multi_reduction <add>, %16, %cst_7 [1] : vector<8x64xf32> to vector<8xf32>
    %18 = vector.shape_cast %17 : vector<8xf32> to vector<8x1xf32>
    %cst_8 = arith.constant 6.400000e+01 : f32
    %19 = vector.broadcast %cst_8 : f32 to vector<8x1xf32>
    %20 = arith.divf %18, %19 : vector<8x1xf32>
    %cst_9 = arith.constant 9.99999974E-6 : f32
    %21 = vector.broadcast %cst_9 : f32 to vector<8x1xf32>
    %22 = arith.addf %20, %21 : vector<8x1xf32>
    %23 = math.rsqrt %22 : vector<8x1xf32>
    %24 = vector.broadcast %23 : vector<8x1xf32> to vector<8x64xf32>
    %25 = arith.mulf %15, %24 : vector<8x64xf32>
    %26 = vector.broadcast %8 : vector<1x64xf32> to vector<8x64xf32>
    %27 = arith.mulf %25, %26 : vector<8x64xf32>
    %28 = vector.broadcast %9 : vector<1x64xf32> to vector<8x64xf32>
    %29 = arith.addf %27, %28 : vector<8x64xf32>
    %cst_10 = arith.constant 0.000000e+00 : f32
    %30 = vector.broadcast %cst_10 : f32 to vector<8x64xf32>
    %31 = arith.maximumf %29, %30 : vector<8x64xf32>
    %c0_11 = arith.constant 0 : index
    %c0_12 = arith.constant 0 : index
    %32 = vector.load %arg1[%c0_11, %c0_12] : memref<8x64xf32, #tpu.memory_space<vmem>>, vector<8x64xf32>
    %33 = arith.addf %32, %31 : vector<8x64xf32>
    %c0_13 = arith.constant 0 : index
    %c0_14 = arith.constant 0 : index
    %c0_15 = arith.constant 0 : index
    %34 = vector.load %arg7[%c0_13, %c0_14, %c0_15] : memref<2x6x64xf32, #tpu.memory_space<vmem>>, vector<1x6x64xf32>
    %35 = vector.shape_cast %34 : vector<1x6x64xf32> to vector<6x64xf32>
    %36 = vector.extract_strided_slice %35 {offsets = [0, 0], sizes = [1, 64], strides = [1, 1]} : vector<6x64xf32> to vector<1x64xf32>
    %37 = vector.extract_strided_slice %35 {offsets = [1, 0], sizes = [1, 64], strides = [1, 1]} : vector<6x64xf32> to vector<1x64xf32>
    %38 = vector.extract_strided_slice %35 {offsets = [2, 0], sizes = [1, 64], strides = [1, 1]} : vector<6x64xf32> to vector<1x64xf32>
    %39 = vector.extract_strided_slice %35 {offsets = [3, 0], sizes = [1, 64], strides = [1, 1]} : vector<6x64xf32> to vector<1x64xf32>
    %40 = vector.extract_strided_slice %35 {offsets = [4, 0], sizes = [1, 64], strides = [1, 1]} : vector<6x64xf32> to vector<1x64xf32>
    %41 = vector.extract_strided_slice %35 {offsets = [5, 0], sizes = [1, 64], strides = [1, 1]} : vector<6x64xf32> to vector<1x64xf32>
    %cst_16 = arith.constant dense<0.000000e+00> : vector<8xf32>
    %42 = vector.multi_reduction <add>, %33, %cst_16 [1] : vector<8x64xf32> to vector<8xf32>
    %43 = vector.shape_cast %42 : vector<8xf32> to vector<8x1xf32>
    %cst_17 = arith.constant 6.400000e+01 : f32
    %44 = vector.broadcast %cst_17 : f32 to vector<8x1xf32>
    %45 = arith.divf %43, %44 : vector<8x1xf32>
    %46 = vector.broadcast %45 : vector<8x1xf32> to vector<8x64xf32>
    %47 = arith.subf %33, %46 : vector<8x64xf32>
    %48 = arith.mulf %47, %47 : vector<8x64xf32>
    %cst_18 = arith.constant dense<0.000000e+00> : vector<8xf32>
    %49 = vector.multi_reduction <add>, %48, %cst_18 [1] : vector<8x64xf32> to vector<8xf32>
    %50 = vector.shape_cast %49 : vector<8xf32> to vector<8x1xf32>
    %cst_19 = arith.constant 6.400000e+01 : f32
    %51 = vector.broadcast %cst_19 : f32 to vector<8x1xf32>
    %52 = arith.divf %50, %51 : vector<8x1xf32>
    %cst_20 = arith.constant 9.99999974E-6 : f32
    %53 = vector.broadcast %cst_20 : f32 to vector<8x1xf32>
    %54 = arith.addf %52, %53 : vector<8x1xf32>
    %55 = math.rsqrt %54 : vector<8x1xf32>
    %56 = vector.broadcast %55 : vector<8x1xf32> to vector<8x64xf32>
    %57 = arith.mulf %47, %56 : vector<8x64xf32>
    %58 = vector.broadcast %36 : vector<1x64xf32> to vector<8x64xf32>
    %59 = arith.mulf %57, %58 : vector<8x64xf32>
    %60 = vector.broadcast %37 : vector<1x64xf32> to vector<8x64xf32>
    %61 = arith.addf %59, %60 : vector<8x64xf32>
    %cst_21 = arith.constant 0.000000e+00 : f32
    %62 = vector.broadcast %cst_21 : f32 to vector<8x64xf32>
    %63 = arith.maximumf %61, %62 : vector<8x64xf32>
    %c0_22 = arith.constant 0 : index
    %c0_23 = arith.constant 0 : index
    %c0_24 = arith.constant 0 : index
    %64 = vector.load %arg5[%c0_22, %c0_23, %c0_24] : memref<2x64x64xbf16, #tpu.memory_space<vmem>>, vector<1x64x64xbf16>
    %65 = vector.shape_cast %64 : vector<1x64x64xbf16> to vector<64x64xbf16>
    %66 = arith.truncf %63 : vector<8x64xf32> to vector<8x64xbf16>
    %cst_25 = arith.constant dense<0.000000e+00> : vector<8x64xf32>
    %67 = tpu.matmul %66, %65, %cst_25 {dimension_numbers = #tpu.dot_dimension_numbers<[1], [0], [0], [1], [0, 0, 1, 1], [], []>} : vector<8x64xbf16>, vector<64x64xbf16>, vector<8x64xf32> -> vector<8x64xf32>
    %68 = vector.broadcast %38 : vector<1x64xf32> to vector<8x64xf32>
    %69 = arith.addf %67, %68 : vector<8x64xf32>
    %cst_26 = arith.constant dense<0.000000e+00> : vector<8xf32>
    %70 = vector.multi_reduction <add>, %69, %cst_26 [1] : vector<8x64xf32> to vector<8xf32>
    %71 = vector.shape_cast %70 : vector<8xf32> to vector<8x1xf32>
    %cst_27 = arith.constant 6.400000e+01 : f32
    %72 = vector.broadcast %cst_27 : f32 to vector<8x1xf32>
    %73 = arith.divf %71, %72 : vector<8x1xf32>
    %74 = vector.broadcast %73 : vector<8x1xf32> to vector<8x64xf32>
    %75 = arith.subf %69, %74 : vector<8x64xf32>
    %76 = arith.mulf %75, %75 : vector<8x64xf32>
    %cst_28 = arith.constant dense<0.000000e+00> : vector<8xf32>
    %77 = vector.multi_reduction <add>, %76, %cst_28 [1] : vector<8x64xf32> to vector<8xf32>
    %78 = vector.shape_cast %77 : vector<8xf32> to vector<8x1xf32>
    %cst_29 = arith.constant 6.400000e+01 : f32
    %79 = vector.broadcast %cst_29 : f32 to vector<8x1xf32>
    %80 = arith.divf %78, %79 : vector<8x1xf32>
    %cst_30 = arith.constant 9.99999974E-6 : f32
    %81 = vector.broadcast %cst_30 : f32 to vector<8x1xf32>
    %82 = arith.addf %80, %81 : vector<8x1xf32>
    %83 = math.rsqrt %82 : vector<8x1xf32>
    %84 = vector.broadcast %83 : vector<8x1xf32> to vector<8x64xf32>
    %85 = arith.mulf %75, %84 : vector<8x64xf32>
    %86 = vector.broadcast %39 : vector<1x64xf32> to vector<8x64xf32>
    %87 = arith.mulf %85, %86 : vector<8x64xf32>
    %88 = vector.broadcast %40 : vector<1x64xf32> to vector<8x64xf32>
    %89 = arith.addf %87, %88 : vector<8x64xf32>
    %cst_31 = arith.constant 0.000000e+00 : f32
    %90 = vector.broadcast %cst_31 : f32 to vector<8x64xf32>
    %91 = arith.maximumf %89, %90 : vector<8x64xf32>
    %c0_32 = arith.constant 0 : index
    %c0_33 = arith.constant 0 : index
    %c0_34 = arith.constant 0 : index
    %92 = vector.load %arg6[%c0_32, %c0_33, %c0_34] : memref<2x64x64xbf16, #tpu.memory_space<vmem>>, vector<1x64x64xbf16>
    %93 = vector.shape_cast %92 : vector<1x64x64xbf16> to vector<64x64xbf16>
    %94 = arith.truncf %91 : vector<8x64xf32> to vector<8x64xbf16>
    %cst_35 = arith.constant dense<0.000000e+00> : vector<8x64xf32>
    %95 = tpu.matmul %94, %93, %cst_35 {dimension_numbers = #tpu.dot_dimension_numbers<[1], [0], [0], [1], [0, 0, 1, 1], [], []>} : vector<8x64xbf16>, vector<64x64xbf16>, vector<8x64xf32> -> vector<8x64xf32>
    %96 = vector.broadcast %41 : vector<1x64xf32> to vector<8x64xf32>
    %97 = arith.addf %95, %96 : vector<8x64xf32>
    %98 = arith.addf %33, %97 : vector<8x64xf32>
    %c1 = arith.constant 1 : index
    %c0_36 = arith.constant 0 : index
    %c0_37 = arith.constant 0 : index
    %99 = vector.load %arg7[%c1, %c0_36, %c0_37] : memref<2x6x64xf32, #tpu.memory_space<vmem>>, vector<1x6x64xf32>
    %100 = vector.shape_cast %99 : vector<1x6x64xf32> to vector<6x64xf32>
    %101 = vector.extract_strided_slice %100 {offsets = [0, 0], sizes = [1, 64], strides = [1, 1]} : vector<6x64xf32> to vector<1x64xf32>
    %102 = vector.extract_strided_slice %100 {offsets = [1, 0], sizes = [1, 64], strides = [1, 1]} : vector<6x64xf32> to vector<1x64xf32>
    %103 = vector.extract_strided_slice %100 {offsets = [2, 0], sizes = [1, 64], strides = [1, 1]} : vector<6x64xf32> to vector<1x64xf32>
    %104 = vector.extract_strided_slice %100 {offsets = [3, 0], sizes = [1, 64], strides = [1, 1]} : vector<6x64xf32> to vector<1x64xf32>
    %105 = vector.extract_strided_slice %100 {offsets = [4, 0], sizes = [1, 64], strides = [1, 1]} : vector<6x64xf32> to vector<1x64xf32>
    %106 = vector.extract_strided_slice %100 {offsets = [5, 0], sizes = [1, 64], strides = [1, 1]} : vector<6x64xf32> to vector<1x64xf32>
    %cst_38 = arith.constant dense<0.000000e+00> : vector<8xf32>
    %107 = vector.multi_reduction <add>, %98, %cst_38 [1] : vector<8x64xf32> to vector<8xf32>
    %108 = vector.shape_cast %107 : vector<8xf32> to vector<8x1xf32>
    %cst_39 = arith.constant 6.400000e+01 : f32
    %109 = vector.broadcast %cst_39 : f32 to vector<8x1xf32>
    %110 = arith.divf %108, %109 : vector<8x1xf32>
    %111 = vector.broadcast %110 : vector<8x1xf32> to vector<8x64xf32>
    %112 = arith.subf %98, %111 : vector<8x64xf32>
    %113 = arith.mulf %112, %112 : vector<8x64xf32>
    %cst_40 = arith.constant dense<0.000000e+00> : vector<8xf32>
    %114 = vector.multi_reduction <add>, %113, %cst_40 [1] : vector<8x64xf32> to vector<8xf32>
    %115 = vector.shape_cast %114 : vector<8xf32> to vector<8x1xf32>
    %cst_41 = arith.constant 6.400000e+01 : f32
    %116 = vector.broadcast %cst_41 : f32 to vector<8x1xf32>
    %117 = arith.divf %115, %116 : vector<8x1xf32>
    %cst_42 = arith.constant 9.99999974E-6 : f32
    %118 = vector.broadcast %cst_42 : f32 to vector<8x1xf32>
    %119 = arith.addf %117, %118 : vector<8x1xf32>
    %120 = math.rsqrt %119 : vector<8x1xf32>
    %121 = vector.broadcast %120 : vector<8x1xf32> to vector<8x64xf32>
    %122 = arith.mulf %112, %121 : vector<8x64xf32>
    %123 = vector.broadcast %101 : vector<1x64xf32> to vector<8x64xf32>
    %124 = arith.mulf %122, %123 : vector<8x64xf32>
    %125 = vector.broadcast %102 : vector<1x64xf32> to vector<8x64xf32>
    %126 = arith.addf %124, %125 : vector<8x64xf32>
    %cst_43 = arith.constant 0.000000e+00 : f32
    %127 = vector.broadcast %cst_43 : f32 to vector<8x64xf32>
    %128 = arith.maximumf %126, %127 : vector<8x64xf32>
    %c1_44 = arith.constant 1 : index
    %c0_45 = arith.constant 0 : index
    %c0_46 = arith.constant 0 : index
    %129 = vector.load %arg5[%c1_44, %c0_45, %c0_46] : memref<2x64x64xbf16, #tpu.memory_space<vmem>>, vector<1x64x64xbf16>
    %130 = vector.shape_cast %129 : vector<1x64x64xbf16> to vector<64x64xbf16>
    %131 = arith.truncf %128 : vector<8x64xf32> to vector<8x64xbf16>
    %cst_47 = arith.constant dense<0.000000e+00> : vector<8x64xf32>
    %132 = tpu.matmul %131, %130, %cst_47 {dimension_numbers = #tpu.dot_dimension_numbers<[1], [0], [0], [1], [0, 0, 1, 1], [], []>} : vector<8x64xbf16>, vector<64x64xbf16>, vector<8x64xf32> -> vector<8x64xf32>
    %133 = vector.broadcast %103 : vector<1x64xf32> to vector<8x64xf32>
    %134 = arith.addf %132, %133 : vector<8x64xf32>
    %cst_48 = arith.constant dense<0.000000e+00> : vector<8xf32>
    %135 = vector.multi_reduction <add>, %134, %cst_48 [1] : vector<8x64xf32> to vector<8xf32>
    %136 = vector.shape_cast %135 : vector<8xf32> to vector<8x1xf32>
    %cst_49 = arith.constant 6.400000e+01 : f32
    %137 = vector.broadcast %cst_49 : f32 to vector<8x1xf32>
    %138 = arith.divf %136, %137 : vector<8x1xf32>
    %139 = vector.broadcast %138 : vector<8x1xf32> to vector<8x64xf32>
    %140 = arith.subf %134, %139 : vector<8x64xf32>
    %141 = arith.mulf %140, %140 : vector<8x64xf32>
    %cst_50 = arith.constant dense<0.000000e+00> : vector<8xf32>
    %142 = vector.multi_reduction <add>, %141, %cst_50 [1] : vector<8x64xf32> to vector<8xf32>
    %143 = vector.shape_cast %142 : vector<8xf32> to vector<8x1xf32>
    %cst_51 = arith.constant 6.400000e+01 : f32
    %144 = vector.broadcast %cst_51 : f32 to vector<8x1xf32>
    %145 = arith.divf %143, %144 : vector<8x1xf32>
    %cst_52 = arith.constant 9.99999974E-6 : f32
    %146 = vector.broadcast %cst_52 : f32 to vector<8x1xf32>
    %147 = arith.addf %145, %146 : vector<8x1xf32>
    %148 = math.rsqrt %147 : vector<8x1xf32>
    %149 = vector.broadcast %148 : vector<8x1xf32> to vector<8x64xf32>
    %150 = arith.mulf %140, %149 : vector<8x64xf32>
    %151 = vector.broadcast %104 : vector<1x64xf32> to vector<8x64xf32>
    %152 = arith.mulf %150, %151 : vector<8x64xf32>
    %153 = vector.broadcast %105 : vector<1x64xf32> to vector<8x64xf32>
    %154 = arith.addf %152, %153 : vector<8x64xf32>
    %cst_53 = arith.constant 0.000000e+00 : f32
    %155 = vector.broadcast %cst_53 : f32 to vector<8x64xf32>
    %156 = arith.maximumf %154, %155 : vector<8x64xf32>
    %c1_54 = arith.constant 1 : index
    %c0_55 = arith.constant 0 : index
    %c0_56 = arith.constant 0 : index
    %157 = vector.load %arg6[%c1_54, %c0_55, %c0_56] : memref<2x64x64xbf16, #tpu.memory_space<vmem>>, vector<1x64x64xbf16>
    %158 = vector.shape_cast %157 : vector<1x64x64xbf16> to vector<64x64xbf16>
    %159 = arith.truncf %156 : vector<8x64xf32> to vector<8x64xbf16>
    %cst_57 = arith.constant dense<0.000000e+00> : vector<8x64xf32>
    %160 = tpu.matmul %159, %158, %cst_57 {dimension_numbers = #tpu.dot_dimension_numbers<[1], [0], [0], [1], [0, 0, 1, 1], [], []>} : vector<8x64xbf16>, vector<64x64xbf16>, vector<8x64xf32> -> vector<8x64xf32>
    %161 = vector.broadcast %106 : vector<1x64xf32> to vector<8x64xf32>
    %162 = arith.addf %160, %161 : vector<8x64xf32>
    %163 = arith.addf %98, %162 : vector<8x64xf32>
    %c0_58 = arith.constant 0 : index
    %c0_59 = arith.constant 0 : index
    %164 = vector.load %arg9[%c0_58, %c0_59] : memref<3x64xf32, #tpu.memory_space<vmem>>, vector<3x64xf32>
    %c0_60 = arith.constant 0 : index
    %c0_61 = arith.constant 0 : index
    %165 = vector.load %arg8[%c0_60, %c0_61] : memref<64x64xbf16, #tpu.memory_space<vmem>>, vector<64x64xbf16>
    %166 = arith.truncf %163 : vector<8x64xf32> to vector<8x64xbf16>
    %cst_62 = arith.constant dense<0.000000e+00> : vector<8x64xf32>
    %167 = tpu.matmul %166, %165, %cst_62 {dimension_numbers = #tpu.dot_dimension_numbers<[1], [0], [0], [1], [0, 0, 1, 1], [], []>} : vector<8x64xbf16>, vector<64x64xbf16>, vector<8x64xf32> -> vector<8x64xf32>
    %168 = vector.extract_strided_slice %164 {offsets = [0, 0], sizes = [1, 64], strides = [1, 1]} : vector<3x64xf32> to vector<1x64xf32>
    %169 = vector.broadcast %168 : vector<1x64xf32> to vector<8x64xf32>
    %170 = arith.addf %167, %169 : vector<8x64xf32>
    %171 = vector.extract_strided_slice %164 {offsets = [1, 0], sizes = [1, 64], strides = [1, 1]} : vector<3x64xf32> to vector<1x64xf32>
    %172 = vector.extract_strided_slice %164 {offsets = [2, 0], sizes = [1, 64], strides = [1, 1]} : vector<3x64xf32> to vector<1x64xf32>
    %cst_63 = arith.constant dense<0.000000e+00> : vector<8xf32>
    %173 = vector.multi_reduction <add>, %170, %cst_63 [1] : vector<8x64xf32> to vector<8xf32>
    %174 = vector.shape_cast %173 : vector<8xf32> to vector<8x1xf32>
    %cst_64 = arith.constant 6.400000e+01 : f32
    %175 = vector.broadcast %cst_64 : f32 to vector<8x1xf32>
    %176 = arith.divf %174, %175 : vector<8x1xf32>
    %177 = vector.broadcast %176 : vector<8x1xf32> to vector<8x64xf32>
    %178 = arith.subf %170, %177 : vector<8x64xf32>
    %179 = arith.mulf %178, %178 : vector<8x64xf32>
    %cst_65 = arith.constant dense<0.000000e+00> : vector<8xf32>
    %180 = vector.multi_reduction <add>, %179, %cst_65 [1] : vector<8x64xf32> to vector<8xf32>
    %181 = vector.shape_cast %180 : vector<8xf32> to vector<8x1xf32>
    %cst_66 = arith.constant 6.400000e+01 : f32
    %182 = vector.broadcast %cst_66 : f32 to vector<8x1xf32>
    %183 = arith.divf %181, %182 : vector<8x1xf32>
    %cst_67 = arith.constant 9.99999974E-6 : f32
    %184 = vector.broadcast %cst_67 : f32 to vector<8x1xf32>
    %185 = arith.addf %183, %184 : vector<8x1xf32>
    %186 = math.rsqrt %185 : vector<8x1xf32>
    %187 = vector.broadcast %186 : vector<8x1xf32> to vector<8x64xf32>
    %188 = arith.mulf %178, %187 : vector<8x64xf32>
    %189 = vector.broadcast %171 : vector<1x64xf32> to vector<8x64xf32>
    %190 = arith.mulf %188, %189 : vector<8x64xf32>
    %191 = vector.broadcast %172 : vector<1x64xf32> to vector<8x64xf32>
    %192 = arith.addf %190, %191 : vector<8x64xf32>
    %cst_68 = arith.constant 0.000000e+00 : f32
    %193 = vector.broadcast %cst_68 : f32 to vector<8x64xf32>
    %194 = arith.maximumf %192, %193 : vector<8x64xf32>
    %c0_69 = arith.constant 0 : index
    %c0_70 = arith.constant 0 : index
    %195 = vector.load %arg10[%c0_69, %c0_70] : memref<64x64xbf16, #tpu.memory_space<vmem>>, vector<64x64xbf16>
    %196 = arith.truncf %194 : vector<8x64xf32> to vector<8x64xbf16>
    %cst_71 = arith.constant dense<0.000000e+00> : vector<8x64xf32>
    %197 = tpu.matmul %196, %195, %cst_71 {dimension_numbers = #tpu.dot_dimension_numbers<[1], [0], [0], [1], [0, 0, 1, 1], [], []>} : vector<8x64xbf16>, vector<64x64xbf16>, vector<8x64xf32> -> vector<8x64xf32>
    %c0_72 = arith.constant 0 : index
    %c0_73 = arith.constant 0 : index
    %198 = vector.load %arg11[%c0_72, %c0_73] : memref<1x64xf32, #tpu.memory_space<vmem>>, vector<1x64xf32>
    %199 = vector.broadcast %198 : vector<1x64xf32> to vector<8x64xf32>
    %200 = arith.addf %197, %199 : vector<8x64xf32>
    %c0_74 = arith.constant 0 : index
    %c0_75 = arith.constant 0 : index
    %201 = vector.load %arg12[%c0_74, %c0_75] : memref<8x128xf32, #tpu.memory_space<vmem>>, vector<8x64xf32>
    tpu.vector_store %arg12[%c0_74, %c0_75], %163 {strides = array<i32>} : memref<8x128xf32, #tpu.memory_space<vmem>>, vector<8x64xf32>,
    %c0_76 = arith.constant 0 : index
    %c64 = arith.constant 64 : index
    %202 = vector.load %arg12[%c0_76, %c64] : memref<8x128xf32, #tpu.memory_space<vmem>>, vector<8x64xf32>
    tpu.vector_store %arg12[%c0_76, %c64], %200 {strides = array<i32>} : memref<8x128xf32, #tpu.memory_space<vmem>>, vector<8x64xf32>,
    return
  }
  func.func @transform_0(%arg0: i32) -> (i32, i32) {
    %c0_i32 = arith.constant 0 : i32
    %c0_i32_0 = arith.constant 0 : i32
    return %arg0, %c0_i32 : i32, i32
  }
  func.func @transform_1(%arg0: i32) -> (i32, i32) {
    %c0_i32 = arith.constant 0 : i32
    %c0_i32_0 = arith.constant 0 : i32
    return %arg0, %c0_i32 : i32, i32
  }
  func.func @transform_2(%arg0: i32) -> (i32, i32) {
    %c0_i32 = arith.constant 0 : i32
    %c0_i32_0 = arith.constant 0 : i32
    %c0_i32_1 = arith.constant 0 : i32
    return %c0_i32, %c0_i32_0 : i32, i32
  }
  func.func @transform_3(%arg0: i32) -> (i32, i32) {
    %c0_i32 = arith.constant 0 : i32
    %c0_i32_0 = arith.constant 0 : i32
    %c0_i32_1 = arith.constant 0 : i32
    return %c0_i32, %c0_i32_0 : i32, i32
  }
  func.func @transform_4(%arg0: i32) -> (i32, i32, i32) {
    %c0_i32 = arith.constant 0 : i32
    %c0_i32_0 = arith.constant 0 : i32
    %c0_i32_1 = arith.constant 0 : i32
    %c0_i32_2 = arith.constant 0 : i32
    return %c0_i32, %c0_i32_0, %c0_i32_1 : i32, i32, i32
  }
  func.func @transform_5(%arg0: i32) -> (i32, i32, i32) {
    %c0_i32 = arith.constant 0 : i32
    %c0_i32_0 = arith.constant 0 : i32
    %c0_i32_1 = arith.constant 0 : i32
    %c0_i32_2 = arith.constant 0 : i32
    return %c0_i32, %c0_i32_0, %c0_i32_1 : i32, i32, i32
  }
  func.func @transform_6(%arg0: i32) -> (i32, i32, i32) {
    %c0_i32 = arith.constant 0 : i32
    %c0_i32_0 = arith.constant 0 : i32
    %c0_i32_1 = arith.constant 0 : i32
    %c0_i32_2 = arith.constant 0 : i32
    return %c0_i32, %c0_i32_0, %c0_i32_1 : i32, i32, i32
  }
  func.func @transform_7(%arg0: i32) -> (i32, i32) {
    %c0_i32 = arith.constant 0 : i32
    %c0_i32_0 = arith.constant 0 : i32
    %c0_i32_1 = arith.constant 0 : i32
    return %c0_i32, %c0_i32_0 : i32, i32
  }
  func.func @transform_8(%arg0: i32) -> (i32, i32) {
    %c0_i32 = arith.constant 0 : i32
    %c0_i32_0 = arith.constant 0 : i32
    %c0_i32_1 = arith.constant 0 : i32
    return %c0_i32, %c0_i32_0 : i32, i32
  }
  func.func @transform_9(%arg0: i32) -> (i32, i32) {
    %c0_i32 = arith.constant 0 : i32
    %c0_i32_0 = arith.constant 0 : i32
    %c0_i32_1 = arith.constant 0 : i32
    return %c0_i32, %c0_i32_0 : i32, i32
  }
  func.func @transform_10(%arg0: i32) -> (i32, i32) {
    %c0_i32 = arith.constant 0 : i32
    %c0_i32_0 = arith.constant 0 : i32
    %c0_i32_1 = arith.constant 0 : i32
    return %c0_i32, %c0_i32_0 : i32, i32
  }
  func.func @transform_11(%arg0: i32) -> (i32, i32) {
    %c0_i32 = arith.constant 0 : i32
    %c0_i32_0 = arith.constant 0 : i32
    return %arg0, %c0_i32 : i32, i32
  }
}

</mosaic_0001>

<bundles_post_ra>
// kernel: dynamics_forward.1
= control target key start
LH: loop header
LB: loop body
LE: loop exit
PB: predicated region body
PF: predicated region fallthrough
CT: control target
= control target key end

     0   :  { %16 = vsyncpa [#allocation3], 0  ;;  %s1412_s0 = inlined_call_operand.hbm [shape: f32[8,64], index: 0, kind: input, shape index: {}]   ;;  %s1413_s1 = inlined_call_operand.hbm [shape: f32[8,32], index: 1, kind: input, shape index: {}]   ;;  %s1414_s2 = inlined_call_operand.hbm [shape: bf16[32,64], index: 2, kind: input, shape index: {}]   ;;  %s1415_s3 = inlined_call_operand.hbm [shape: f32[3,64], index: 3, kind: input, shape index: {}]   ;;  %s1416_s4 = inlined_call_operand.vmem [shape: bf16[2,64,64], index: 4, kind: input, shape index: {}]   ;;  %s1417_s5 = inlined_call_operand.vmem [shape: bf16[2,64,64], index: 5, kind: input, shape index: {}]   ;;  %s1418_s6 = inlined_call_operand.vmem [shape: f32[2,6,64], index: 6, kind: input, shape index: {}]   ;;  %s1419_s7 = inlined_call_operand.hbm [shape: bf16[64,64], index: 7, kind: input, shape index: {}]   ;;  %s1420_s8 = inlined_call_operand.vmem [shape: f32[3,64], index: 8, kind: input, shape index: {}]   ;;  %s1421_s9 = inlined_call_operand.vmem [shape: bf16[64,64], index: 9, kind: input, shape index: {}]   ;;  %s1422_s10 = inlined_call_operand.vmem [shape: f32[1,64], index: 10, kind: input, shape index: {}]   ;;  %s1423_s11 = inlined_call_operand.vmem [shape: f32[8,128], index: 11, kind: output, shape index: {}]  }
   0x1   :  { %17 = vsyncpa [#allocation5], 0 }
   0x2   :  { %18 = vsyncpa [#allocation8], 0  ;;  %s1138_s17 = smov [#allocation4]   ;;  %s1139_s19 = smov [#allocation7]  }
   0x3   :  { %s35_s18 = sshll.u32 %s1138_s17, 4  ;;  %s57_s20 = sshll.u32 %s1139_s19, 4  ;;  %s36_s18 = int_to_ptr.vmem [resolvable:$true] %s35_s18  ;;  %s58_s20 = int_to_ptr.vmem [resolvable:$true] %s57_s20 }
   0x4   :  { %s1040_s21 = scalar_lea.vmem %s36_s18, 128  ;;  %p1045_p1 = scmp.lt.s32.totalorder %s36_s18, %s36_s18 }
   0x5   :  { %p1041_p0 = scmp.ne.s32.totalorder %s36_s18, %s1040_s21  ;;  %p1046_p2 = scmp.lt.s32.totalorder %s1040_s21, %s1040_s21 }
   0x7   :  { %p1047_p3 = por %p1046_p2, %p1045_p1 }
   0x9   :  { %p1048_p4 = pnand %p1047_p3, %p1041_p0 }
   0xb   :  { %1051 = shalt.err (!%p1048_p4)
}
   0xc   :  { %38 = dma.hbm_to_vmem [thread:$0]  %s1413_s1, 128, %s36_s18, [#allocation5]  }
   0xd   :  { %s1060_s24 = scalar_lea.vmem %s58_s20, 64  ;;  %p1065_p6 = scmp.lt.s32.totalorder %s58_s20, %s58_s20 }
   0xe   :  { %p1061_p5 = scmp.ne.s32.totalorder %s58_s20, %s1060_s24  ;;  %p1066_p7 = scmp.lt.s32.totalorder %s1060_s24, %s1060_s24 }
  0x10   :  { %p1067_p8 = por %p1066_p7, %p1065_p6 }
  0x12   :  { %p1068_p9 = pnand %p1067_p8, %p1061_p5 }
  0x14   :  { %1071 = shalt.err (!%p1068_p9)
}
  0x15   :  { %60 = dma.hbm_to_vmem [thread:$0]  %s1415_s3, 64, %s58_s20, [#allocation8]  }
  0x16   :  { %s1140_s27 = smov [#allocation2]   ;;  %s1141_s29 = smov [#allocation6]  }
  0x17   :  { %s25_s28 = sshll.u32 %s1140_s27, 4  ;;  %s44_s30 = sshll.u32 %s1141_s29, 4  ;;  %s26_s28 = int_to_ptr.vmem [resolvable:$true] %s25_s28  ;;  %s45_s30 = int_to_ptr.vmem [resolvable:$true] %s44_s30 }
  0x18   :  { %s1080_s12 = scalar_lea.vmem %s26_s28, 128  ;;  %p1085_p11 = scmp.lt.s32.totalorder %s26_s28, %s26_s28 }
  0x19   :  { %p1081_p10 = scmp.ne.s32.totalorder %s26_s28, %s1080_s12  ;;  %p1086_p12 = scmp.lt.s32.totalorder %s1080_s12, %s1080_s12 }
  0x1b   :  { %p1087_p13 = por %p1086_p12, %p1085_p11 }
  0x1d   :  { %p1088_p0 = pnand %p1087_p13, %p1081_p10 }
  0x1f   :  { %1091 = shalt.err (!%p1088_p0)
}
  0x20   :  { %28 = dma.hbm_to_vmem [thread:$0]  %s1412_s0, 128, %s26_s28, [#allocation3]  }
  0x21   :  { %s1100_s14 = scalar_lea.vmem %s45_s30, 256  ;;  %p1105_p2 = scmp.lt.s32.totalorder %s45_s30, %s45_s30 }
  0x22   :  { %p1101_p1 = scmp.ne.s32.totalorder %s45_s30, %s1100_s14  ;;  %p1106_p3 = scmp.lt.s32.totalorder %s1100_s14, %s1100_s14 }
  0x24   :  { %p1107_p4 = por %p1106_p3, %p1105_p2 }
  0x26   :  { %p1108_p5 = pnand %p1107_p4, %p1101_p1 }
  0x28   :  { %1111 = shalt.err (!%p1108_p5)
}
  0x29   :  { %s1142_s3 = smov 64   ;;  %s1143_s15 = smov 4  }
  0x2a   :  { %50 = dma.hbm_to_vmem [thread:$0]  %s1414_s2, 256, %s45_s30, [#allocation5], %s1142_s3, %s1142_s3, %s1143_s15  }
  0x2b   :  { %s1144_s18 = smov [#allocation9]  }
  0x2c   :  { %s72_s19 = sshll.u32 %s1144_s18, 4  ;;  %s73_s19 = int_to_ptr.vmem [resolvable:$true] %s72_s19 }
  0x2d   :  { %s1120_s20 = scalar_lea.vmem %s73_s19, 512  ;;  %p1125_p7 = scmp.lt.s32.totalorder %s73_s19, %s73_s19 }
  0x2e   :  { %p1121_p6 = scmp.ne.s32.totalorder %s73_s19, %s1120_s20  ;;  %p1126_p8 = scmp.lt.s32.totalorder %s1120_s20, %s1120_s20 }
  0x30   :  { %p1127_p9 = por %p1126_p8, %p1125_p7 }
  0x32   :  { %p1128_p10 = pnand %p1127_p9, %p1121_p6 }
  0x34   :  { %1131 = shalt.err (!%p1128_p10)
}
  0x35   :  { %78 = dma.hbm_to_vmem [thread:$0]  %s1419_s7, 512, %s73_s19, [#allocation8], %s1142_s3, %s1142_s3, %s1143_s15  }
  0x36   :  { %1132 = dma.done.wait [#allocation3], 128  }
  0x37   :  { %1133 = vsyncadd [#allocation3], 4294967168 }
  0x38   :  { %1134 = dma.done.wait [#allocation5], 384  }
  0x39   :  { %1135 = vsyncadd [#allocation5], 4294966912 }
  0x3a   :  { %1136 = dma.done.wait [#allocation8], 576  }
  0x3b   :  { %1137 = vsyncadd [#allocation8], 4294966720  ;;  %v1145_v0 = vmov 0.0   ;;  %vm1146_vm0 = vmmov 0   ;;  %v994_v1 = vld [vmem:[#allocation6 + $0x8] sm:$0xff]   ;;  %v995_v2 = vld [vmem:[#allocation6] sm:$0xff]   ;;  %v108_v5 = vlaneseq }
  0x3c   :  { %905 = vmatprep.subr.bf16.mxu0 %v1145_v0  ;;  %909 = vmatprep.mubr.msk.bf16.mxu0 %vm1146_vm0, %v1145_v0  ;;  %v102_v3 = vld [vmem:[#allocation4] sm:$0xff]  ;;  %vm124_vm1 = vcmask 261120   ;;  %v101_v8 = vld [vmem:[#allocation7] sm:$0x7]  ;;  %vm168_vm2 = vcmask 523264   ;;  %v996_v41 = vld [vmem:[%s1416_s4 + $0x18] sm:$0xff]  }
  0x3d   :  { %913 = vmatprep.subr.bf16.mxu1 %v1145_v0  ;;  %921 = vmatprep.mubr.msk.bf16.mxu1 %vm1146_vm0, %v1145_v0  ;;  %v107_v4 = vpack.c.bf16 %v102_v3, %v102_v3  ;;  %v1236_v6 = vshrl.u32 %v108_v5, 7  ;;  %v194_v32 = vld [vmem:[#allocation2] sm:$0xff]  ;;  %v997_v42 = vld [vmem:[%s1416_s4 + $0x10] sm:$0xff]   ;;  %v998_v43 = vld [vmem:[%s1416_s4 + $0x8] sm:$0xff]   ;;  %vm812_vm3 = vcmask 1048064  }
  0x3e   :  { %906 = vmatpush3.bf16.msra.mxu0 %v994_v1  ;;  %914 = vmatpush3.bf16.msra.mxu1 %v996_v41  ;;  %v999_v44 = vld [vmem:[%s1416_s4] sm:$0xff]  }
  0x3f   :  { %907 = vmatprep.subr.bf16.mxu0 %v1145_v0  ;;  %v1239_v7 = vsub.s32 0, %v1236_v6  ;;  %v1245_v24 = vsub.s32 1, %v1236_v6  ;;  %v1248_v25 = vsub.s32 2, %v1236_v6  ;;  %915 = vmatprep.subr.bf16.mxu1 %v1145_v0  ;;  %v196_v48 = vld [vmem:[%s1418_s6] sm:$0x3f] }
  0x41   :  { %v111_v9 = vrot.slane %v101_v8, %v1239_v7  ;;  %v186_v26 = vrot.slane %v101_v8, %v1245_v24  ;;  %v191_v28 = vrot.slane %v101_v8, %v1248_v25  ;;  %v213_v49 = vrot.slane %v196_v48, %v1239_v7  ;;  %v1000_v8 = vld [vmem:[%s1417_s5 + $0x18] sm:$0xff]  }
  0x42   :  { %908 = vmatpush3.bf16.msra.mxu0 %v995_v2  ;;  %916 = vmatpush3.bf16.msra.mxu1 %v997_v42  ;;  %v218_v52 = vrot.slane %v196_v48, %v1245_v24  ;;  %v233_v57 = vrot.slane %v196_v48, %v1248_v25  ;;  %v1004_v42 = vld [vmem:[%s1416_s4 + $0x38] sm:$0xff]  }
  0x43   :  { %925 = vmatprep.subr.bf16.mxu0 %v1145_v0  ;;  %917 = vmatprep.subr.bf16.mxu1 %v1145_v0 }
  0x45   :  { %910 = vmatmul.mubr.msk.bf16.vlgmr.msra.gmra.mxu0 %vm124_vm1, %v107_v4 }
  0x46   :  { %933 = vmatprep.mubr.msk.bf16.mxu0 %vm1146_vm0, %v1145_v0  ;;  %918 = vmatpush3.bf16.msra.mxu1 %v998_v43  ;;  %v1006_v43 = vld [vmem:[%s1416_s4 + $0x28] sm:$0xff]  }
  0x47   :  { %919 = vmatprep.subr.bf16.mxu1 %v1145_v0  ;;  %926 = vmatpush3.bf16.msra.mxu0 %v1000_v8  ;;  %v1008_v8 = vld [vmem:[%s1417_s5 + $0x38] sm:$0xff]  }
  0x48   :  { %927 = vmatprep.subr.bf16.mxu0 %v1145_v0 }
  0x4a   :  { %920 = vmatpush3.bf16.msra.mxu1 %v999_v44  ;;  %v1007_v44 = vld [vmem:[%s1416_s4 + $0x20] sm:$0xff]  }
  0x4b   :  { %937 = vmatprep.subr.bf16.mxu1 %v1145_v0 }
 0x105   :  { %v162_v10 = vpop.f32.mrf.mxu0 }
 0x106   :  { %v163_v11 = vadd.f32 %v162_v10, %v111_v9  ;;  %v1001_v9 = vld [vmem:[%s1417_s5 + $0x10] sm:$0xff]   ;;  %v1002_v10 = vld [vmem:[%s1417_s5 + $0x8] sm:$0xff]  }
 0x107   :  { %v911_v12 = vpop.f32.mrf.mxu0  ;;  %928 = vmatpush3.bf16.msra.mxu0 %v1001_v9  ;;  %v1009_v9 = vld [vmem:[%s1417_s5 + $0x30] sm:$0xff]  }
 0x108   :  { %v169_v13 = vsel %vm168_vm2, %v163_v11, 0.0  ;;  %929 = vmatprep.subr.bf16.mxu0 %v1145_v0 }
 0x109   :  { %v165_v14 = vpop.f32.mrf.mxu0  ;;  %170 = vadd.xlane.f32.xlu0 %v169_v13 }
 0x10b   :  { %v912_v15 = vpop.f32.mrf.mxu0  ;;  %930 = vmatpush3.bf16.msra.mxu0 %v1002_v10  ;;  %v1010_v10 = vld [vmem:[%s1417_s5 + $0x28] sm:$0xff]  }
 0x10c   :  { %931 = vmatprep.subr.bf16.mxu0 %v1145_v0  ;;  %v316_v15 = vsub.s32 3, %v1236_v6 }
 0x192   :  { %v171_v16 = vpop.xlane.xlu0 %170 }
 0x193   :  { %v173_v17 = vmul.f32 0.015625, %v171_v16  ;;  %v321_v16 = vsub.s32 4, %v1236_v6 }
 0x195   :  { %v174_v18 = vsub.f32 %v163_v11, %v173_v17  ;;  %v1003_v11 = vld [vmem:[%s1417_s5] sm:$0xff]   ;;  %v317_v17 = vrot.slane %v196_v48, %v316_v15 }
 0x196   :  { %932 = vmatpush3.bf16.msra.mxu0 %v1003_v11  ;;  %v1011_v11 = vld [vmem:[%s1417_s5 + $0x20] sm:$0xff]  }
 0x197   :  { %v175_v19 = vmul.f32 %v174_v18, %v174_v18  ;;  %949 = vmatprep.subr.bf16.mxu0 %v1145_v0 }
 0x199   :  { %v176_v20 = vsel %vm168_vm2, %v175_v19, 0.0 }
 0x19a   :  { %177 = vadd.xlane.f32.xlu0 %v176_v20  ;;  %v322_v20 = vrot.slane %v196_v48, %v321_v16 }
 0x223   :  { %v178_v21 = vpop.xlane.xlu0 %177 }
 0x224   :  { %v179_v22 = vmul.f32 0.015625, %v178_v21 }
 0x226   :  { %v180_v23 = vadd.f32 1e-05, %v179_v22 }
 0x228   :  { %1020 = vrsqrt.f32 %v180_v23 }
 0x235   :  { %v1021_v27 = vpop.eup %1020 }
 0x236   :  { %v182_v29 = vmul.f32 %v1021_v27, %v174_v18  ;;  %v336_v27 = vsub.s32 5, %v1236_v6  ;;  %v619_v6 = vld [vmem:[%s1420_s8] sm:$0x7] }
 0x238   :  { %v187_v30 = vmul.f32 %v186_v26, %v182_v29 }
 0x23a   :  { %v192_v31 = vadd.f32 %v191_v28, %v187_v30  ;;  %v337_v28 = vrot.slane %v196_v48, %v336_v27  ;;  %v834_v48 = vld [vmem:[%s1418_s6 + $0x8] sm:$0x3f] }
 0x23c   :  { %v193_v33 = vmax.f32 %v192_v31, 0.0 }
 0x23e   :  { %v1252_v34 = vadd.f32 %v194_v32, %v193_v33 }
 0x240   :  { %v197_v35 = vsel %vm168_vm2, %v1252_v34, 0.0 }
 0x241   :  { %198 = vadd.xlane.f32.xlu1 %v197_v35 }
 0x2ca   :  { %v199_v36 = vpop.xlane.xlu1 %198 }
 0x2cb   :  { %v200_v37 = vmul.f32 0.015625, %v199_v36 }
 0x2cd   :  { %v201_v38 = vsub.f32 %v1252_v34, %v200_v37 }
 0x2cf   :  { %v202_v39 = vmul.f32 %v201_v38, %v201_v38 }
 0x2d1   :  { %v203_v40 = vsel %vm168_vm2, %v202_v39, 0.0 }
 0x2d2   :  { %204 = vadd.xlane.f32.xlu1 %v203_v40 }
 0x35b   :  { %v205_v45 = vpop.xlane.xlu1 %204 }
 0x35c   :  { %v206_v46 = vmul.f32 0.015625, %v205_v45 }
 0x35e   :  { %v207_v47 = vadd.f32 1e-05, %v206_v46 }
 0x360   :  { %1022 = vrsqrt.f32 %v207_v47 }
 0x36d   :  { %v1023_v50 = vpop.eup %1022 }
 0x36e   :  { %v209_v51 = vmul.f32 %v1023_v50, %v201_v38 }
 0x370   :  { %v214_v53 = vmul.f32 %v213_v49, %v209_v51  ;;  %v424_v49 = vrot.slane %v834_v48, %v1239_v7 }
 0x372   :  { %v219_v54 = vadd.f32 %v218_v52, %v214_v53  ;;  %v429_v52 = vrot.slane %v834_v48, %v1245_v24 }
 0x374   :  { %v220_v55 = vmax.f32 %v219_v54, 0.0 }
 0x376   :  { %v229_v56 = vpack.c.bf16 %v220_v55, %v220_v55 }
 0x378   :  { %922 = vmatmul.mubr.msk.bf16.vlgmr.msra.gmra.mxu1 %vm168_vm2, %v229_v56 }
 0x379   :  { %945 = vmatprep.mubr.msk.bf16.mxu1 %vm1146_vm0, %v1145_v0  ;;  %938 = vmatpush3.bf16.msra.mxu1 %v1004_v42 }
 0x37a   :  { %939 = vmatprep.subr.bf16.mxu1 %v1145_v0 }
 0x438   :  { %v295_v58 = vpop.f32.mrf.mxu1 }
 0x439   :  { %v296_v59 = vadd.f32 %v295_v58, %v233_v57  ;;  %v445_v57 = vrot.slane %v834_v48, %v1248_v25 }
 0x43a   :  { %v923_v60 = vpop.f32.mrf.mxu1 }
 0x43b   :  { %v301_v61 = vsel %vm168_vm2, %v296_v59, 0.0 }
 0x43c   :  { %302 = vadd.xlane.f32.xlu0 %v301_v61  ;;  %v298_v62 = vpop.f32.mrf.mxu1 }
 0x43e   :  { %v924_v63 = vpop.f32.mrf.mxu1 }
 0x4c5   :  { %v303_v1 = vpop.xlane.xlu0 %302 }
 0x4c6   :  { %v304_v2 = vmul.f32 0.015625, %v303_v1 }
 0x4c8   :  { %v305_v3 = vsub.f32 %v296_v59, %v304_v2 }
 0x4ca   :  { %v306_v4 = vmul.f32 %v305_v3, %v305_v3 }
 0x4cc   :  { %v307_v5 = vsel %vm168_vm2, %v306_v4, 0.0 }
 0x4cd   :  { %308 = vadd.xlane.f32.xlu1 %v307_v5 }
 0x556   :  { %v309_v12 = vpop.xlane.xlu1 %308 }
 0x557   :  { %v310_v13 = vmul.f32 0.015625, %v309_v12  ;;  %v1012_v12 = vld [vmem:[#allocation9 + $0x18] sm:$0xff]  }
 0x559   :  { %v311_v14 = vadd.f32 1e-05, %v310_v13  ;;  %v1013_v13 = vld [vmem:[#allocation9 + $0x10] sm:$0xff]  }
 0x55b   :  { %1024 = vrsqrt.f32 %v311_v14 }
 0x568   :  { %v1025_v18 = vpop.eup %1024 }
 0x569   :  { %v313_v19 = vmul.f32 %v1025_v18, %v305_v3 }
 0x56b   :  { %v318_v21 = vmul.f32 %v317_v17, %v313_v19  ;;  %v529_v19 = vrot.slane %v834_v48, %v316_v15  ;;  %v550_v15 = vrot.slane %v834_v48, %v336_v27  ;;  %v632_v27 = vrot.slane %v619_v6, %v1239_v7  ;;  %v1017_v7 = vld [vmem:[%s1421_s9 + $0x10] sm:$0xff]  }
 0x56d   :  { %v323_v22 = vadd.f32 %v322_v20, %v318_v21 }
 0x56f   :  { %v324_v23 = vmax.f32 %v323_v22, 0.0  ;;  %v534_v22 = vrot.slane %v834_v48, %v321_v16 }
 0x571   :  { %v333_v26 = vpack.c.bf16 %v324_v23, %v324_v23 }
 0x573   :  { %934 = vmatmul.mubr.msk.bf16.vlgmr.msra.gmra.mxu0 %vm168_vm2, %v333_v26 }
 0x574   :  { %957 = vmatprep.mubr.msk.bf16.mxu0 %vm1146_vm0, %v1145_v0  ;;  %950 = vmatpush3.bf16.msra.mxu0 %v1008_v8 }
 0x575   :  { %951 = vmatprep.subr.bf16.mxu0 %v1145_v0 }
 0x578   :  { %952 = vmatpush3.bf16.msra.mxu0 %v1009_v9 }
 0x579   :  { %953 = vmatprep.subr.bf16.mxu0 %v1145_v0 }
 0x57c   :  { %954 = vmatpush3.bf16.msra.mxu0 %v1010_v10 }
 0x57d   :  { %955 = vmatprep.subr.bf16.mxu0 %v1145_v0 }
 0x580   :  { %956 = vmatpush3.bf16.msra.mxu0 %v1011_v11 }
 0x581   :  { %973 = vmatprep.subr.bf16.mxu0 %v1145_v0 }
 0x633   :  { %v399_v29 = vpop.f32.mrf.mxu0 }
 0x634   :  { %v400_v30 = vadd.f32 %v399_v29, %v337_v28 }
 0x635   :  { %v935_v31 = vpop.f32.mrf.mxu0 }
 0x636   :  { %v1314_v32 = vadd.f32 %v400_v30, %v1252_v34  ;;  %v1005_v34 = vld [vmem:[%s1416_s4 + $0x30] sm:$0xff]   ;;  %v1015_v31 = vld [vmem:[#allocation9] sm:$0xff]  }
 0x637   :  { %v402_v33 = vpop.f32.mrf.mxu0  ;;  %940 = vmatpush3.bf16.msra.mxu1 %v1005_v34  ;;  %v1014_v30 = vld [vmem:[#allocation9 + $0x8] sm:$0xff]  }
 0x638   :  { %v408_v35 = vsel %vm168_vm2, %v1314_v32, 0.0  ;;  %941 = vmatprep.subr.bf16.mxu1 %v1145_v0 }
 0x639   :  { %409 = vadd.xlane.f32.xlu0 %v408_v35  ;;  %v936_v36 = vpop.f32.mrf.mxu0 }
 0x63b   :  { %942 = vmatpush3.bf16.msra.mxu1 %v1006_v43 }
 0x63c   :  { %943 = vmatprep.subr.bf16.mxu1 %v1145_v0 }
 0x63f   :  { %944 = vmatpush3.bf16.msra.mxu1 %v1007_v44 }
 0x640   :  { %961 = vmatprep.subr.bf16.mxu1 %v1145_v0 }
 0x6c2   :  { %v410_v37 = vpop.xlane.xlu0 %409 }
 0x6c3   :  { %v411_v38 = vmul.f32 0.015625, %v410_v37 }
 0x6c5   :  { %v412_v39 = vsub.f32 %v1314_v32, %v411_v38 }
 0x6c7   :  { %v413_v40 = vmul.f32 %v412_v39, %v412_v39 }
 0x6c9   :  { %v414_v41 = vsel %vm168_vm2, %v413_v40, 0.0 }
 0x6ca   :  { %415 = vadd.xlane.f32.xlu1 %v414_v41 }
 0x753   :  { %v416_v45 = vpop.xlane.xlu1 %415 }
 0x754   :  { %v417_v46 = vmul.f32 0.015625, %v416_v45 }
 0x756   :  { %v418_v47 = vadd.f32 1e-05, %v417_v46 }
 0x758   :  { %1026 = vrsqrt.f32 %v418_v47 }
 0x765   :  { %v1027_v50 = vpop.eup %1026 }
 0x766   :  { %v420_v51 = vmul.f32 %v1027_v50, %v412_v39  ;;  %v1018_v50 = vld [vmem:[%s1421_s9 + $0x8] sm:$0xff]  }
 0x768   :  { %v425_v53 = vmul.f32 %v424_v49, %v420_v51  ;;  %v1016_v49 = vld [vmem:[%s1421_s9 + $0x18] sm:$0xff]   ;;  %v1019_v51 = vld [vmem:[%s1421_s9] sm:$0xff]  }
 0x76a   :  { %v430_v54 = vadd.f32 %v429_v52, %v425_v53 }
 0x76c   :  { %v431_v55 = vmax.f32 %v430_v54, 0.0 }
 0x76e   :  { %v441_v56 = vpack.c.bf16 %v431_v55, %v431_v55  ;;  %v716_v55 = vrot.slane %v619_v6, %v1245_v24 }
 0x770   :  { %946 = vmatmul.mubr.msk.bf16.vlgmr.msra.gmra.mxu1 %vm168_vm2, %v441_v56 }
 0x771   :  { %969 = vmatprep.mubr.msk.bf16.mxu1 %vm1146_vm0, %v1145_v0  ;;  %962 = vmatpush3.bf16.msra.mxu1 %v1012_v12 }
 0x772   :  { %963 = vmatprep.subr.bf16.mxu1 %v1145_v0 }
 0x775   :  { %964 = vmatpush3.bf16.msra.mxu1 %v1013_v13 }
 0x776   :  { %965 = vmatprep.subr.bf16.mxu1 %v1145_v0 }
 0x779   :  { %966 = vmatpush3.bf16.msra.mxu1 %v1014_v30 }
 0x77a   :  { %967 = vmatprep.subr.bf16.mxu1 %v1145_v0 }
 0x77d   :  { %968 = vmatpush3.bf16.msra.mxu1 %v1015_v31 }
 0x830   :  { %v507_v58 = vpop.f32.mrf.mxu1 }
 0x831   :  { %v508_v59 = vadd.f32 %v507_v58, %v445_v57  ;;  %v721_v57 = vrot.slane %v619_v6, %v1248_v25 }
 0x832   :  { %v947_v60 = vpop.f32.mrf.mxu1 }
 0x833   :  { %v513_v61 = vsel %vm168_vm2, %v508_v59, 0.0 }
 0x834   :  { %514 = vadd.xlane.f32.xlu0 %v513_v61  ;;  %v510_v62 = vpop.f32.mrf.mxu1 }
 0x836   :  { %v948_v63 = vpop.f32.mrf.mxu1 }
 0x8bd   :  { %v515_v1 = vpop.xlane.xlu0 %514 }
 0x8be   :  { %v516_v2 = vmul.f32 0.015625, %v515_v1 }
 0x8c0   :  { %v517_v3 = vsub.f32 %v508_v59, %v516_v2 }
 0x8c2   :  { %v518_v4 = vmul.f32 %v517_v3, %v517_v3 }
 0x8c4   :  { %v519_v5 = vsel %vm168_vm2, %v518_v4, 0.0 }
 0x8c5   :  { %520 = vadd.xlane.f32.xlu1 %v519_v5 }
 0x94e   :  { %v521_v14 = vpop.xlane.xlu1 %520 }
 0x94f   :  { %v522_v17 = vmul.f32 0.015625, %v521_v14 }
 0x951   :  { %v523_v18 = vadd.f32 1e-05, %v522_v17 }
 0x953   :  { %1028 = vrsqrt.f32 %v523_v18 }
 0x960   :  { %v1029_v20 = vpop.eup %1028 }
 0x961   :  { %v525_v21 = vmul.f32 %v1029_v20, %v517_v3 }
 0x963   :  { %v530_v23 = vmul.f32 %v529_v19, %v525_v21 }
 0x965   :  { %v535_v26 = vadd.f32 %v534_v22, %v530_v23 }
 0x967   :  { %v536_v28 = vmax.f32 %v535_v26, 0.0 }
 0x969   :  { %v546_v29 = vpack.c.bf16 %v536_v28, %v536_v28 }
 0x96b   :  { %958 = vmatmul.mubr.msk.bf16.vlgmr.msra.gmra.mxu0 %vm168_vm2, %v546_v29 }
 0x96c   :  { %981 = vmatprep.mubr.msk.bf16.mxu0 %vm1146_vm0, %v1145_v0  ;;  %974 = vmatpush3.bf16.msra.mxu0 %v1016_v49 }
 0x96d   :  { %975 = vmatprep.subr.bf16.mxu0 %v1145_v0 }
 0x970   :  { %976 = vmatpush3.bf16.msra.mxu0 %v1017_v7 }
 0x971   :  { %977 = vmatprep.subr.bf16.mxu0 %v1145_v0 }
 0x974   :  { %978 = vmatpush3.bf16.msra.mxu0 %v1018_v50 }
 0x975   :  { %979 = vmatprep.subr.bf16.mxu0 %v1145_v0  ;;  %v866_v0 = vld [vmem:[%s1422_s10] ss:$0 sm:$0xff] }
 0x978   :  { %980 = vmatpush3.bf16.msra.mxu0 %v1019_v51 }
 0xa2b   :  { %v612_v33 = vpop.f32.mrf.mxu0 }
 0xa2c   :  { %v613_v16 = vadd.f32 %v612_v33, %v550_v15 }
 0xa2d   :  { %v959_v35 = vpop.f32.mrf.mxu0 }
 0xa2e   :  { %v618_v36 = vadd.f32 %v613_v16, %v1314_v32 }
 0xa2f   :  { %v615_v37 = vpop.f32.mrf.mxu0 }
 0xa30   :  { %v628_v38 = vpack.c.bf16 %v618_v36, %v618_v36  ;;  %807 = vst.msk [vmem:[%s1423_s11] sm:$0xff] %vm168_vm2, %v618_v36 }
 0xa31   :  { %v960_v39 = vpop.f32.mrf.mxu0 }
 0xa32   :  { %970 = vmatmul.mubr.msk.bf16.vlgmr.msra.gmra.mxu1 %vm168_vm2, %v628_v38 }
 0xaf2   :  { %v694_v40 = vpop.f32.mrf.mxu1 }
 0xaf3   :  { %v695_v41 = vadd.f32 %v694_v40, %v632_v27 }
 0xaf4   :  { %v971_v42 = vpop.f32.mrf.mxu1 }
 0xaf5   :  { %v700_v32 = vsel %vm168_vm2, %v695_v41, 0.0 }
 0xaf6   :  { %701 = vadd.xlane.f32.xlu0 %v700_v32  ;;  %v697_v34 = vpop.f32.mrf.mxu1 }
 0xaf8   :  { %v972_v43 = vpop.f32.mrf.mxu1 }
 0xb7f   :  { %v702_v44 = vpop.xlane.xlu0 %701 }
 0xb80   :  { %v703_v45 = vmul.f32 0.015625, %v702_v44 }
 0xb82   :  { %v704_v46 = vsub.f32 %v695_v41, %v703_v45 }
 0xb84   :  { %v705_v47 = vmul.f32 %v704_v46, %v704_v46 }
 0xb86   :  { %v706_v48 = vsel %vm168_vm2, %v705_v47, 0.0 }
 0xb87   :  { %707 = vadd.xlane.f32.xlu1 %v706_v48 }
 0xc10   :  { %v708_v52 = vpop.xlane.xlu1 %707 }
 0xc11   :  { %v709_v53 = vmul.f32 0.015625, %v708_v52 }
 0xc13   :  { %v710_v54 = vadd.f32 1e-05, %v709_v53 }
 0xc15   :  { %1030 = vrsqrt.f32 %v710_v54 }
 0xc22   :  { %v1031_v56 = vpop.eup %1030 }
 0xc23   :  { %v712_v58 = vmul.f32 %v1031_v56, %v704_v46 }
 0xc25   :  { %v717_v59 = vmul.f32 %v716_v55, %v712_v58 }
 0xc27   :  { %v722_v60 = vadd.f32 %v721_v57, %v717_v59 }
 0xc29   :  { %v723_v61 = vmax.f32 %v722_v60, 0.0 }
 0xc2b   :  { %v732_v62 = vpack.c.bf16 %v723_v61, %v723_v61 }
 0xc2d   :  { %982 = vmatmul.mubr.msk.bf16.vlgmr.msra.gmra.mxu0 %vm168_vm2, %v732_v62 }
 0xced   :  { %v801_v63 = vpop.f32.mrf.mxu0 }
 0xcee   :  { %v802_v1 = vadd.f32 %v866_v0, %v801_v63 }
 0xcef   :  { %v983_v2 = vpop.f32.mrf.mxu0 }
 0xcf0   :  { %809 = vrot.lane.b32.xlu0 %v802_v1, %s1142_s3 }
 0xcf1   :  { %v804_v24 = vpop.f32.mrf.mxu0 }
 0xcf3   :  { %v984_v3 = vpop.f32.mrf.mxu0 }
 0xd62   :  { %v810_v25 = vpop.permute.xlu0 %809 }
 0xd63   :  { %813 = vst.msk [vmem:[%s1423_s11] sm:$0xff] %vm812_vm3, %v810_v25 }
 0xd64   :  { %818 = vsyncpa [#allocation3], 1 }
 0xd65   :  { %819 = vsyncpa [#allocation5], 1 }
 0xd66   :  { %820 = vsyncpa [#allocation8], 1 }

</bundles_post_ra>
